<compile_context>
chip_gen: v5e
topology: v5e:2x2
jax: 0.10.0
libtpu: 0.0.40
codegen_flags: <defaults>
</compile_context>

<pallas_src>
import functools

import jax
import jax.numpy as jnp
import numpy as np
from jax.experimental import pallas as pl
from jax.experimental.pallas import tpu as pltpu

IGNORE_INDEX = 255


def _vmem_budget():
    """Generation-aware (logits_block_budget_bytes, vmem_limit_bytes)."""
    cap = 64 * 1024 * 1024  # conservative default (v7x per-TC)
    try:
        info = pltpu.get_tpu_info()
        cap = int(getattr(info, "vmem_capacity_bytes", cap))
    except Exception:
        pass
    if cap >= 100 * 1024 * 1024:  # v5e / v6e: 128 MiB VMEM
        return 8 * 1024 * 1024, 80 * 1024 * 1024
    return 4 * 1024 * 1024, 48 * 1024 * 1024  # v7x: 64 MiB per TensorCore


def _choose_tile_h(c, h, w, itemsize, budget):
    """Rows of H per grid step.

    Largest multiple of 8 whose (c, th, w) block fits `budget` (or full H when
    small). Prefers a th that divides H (no ragged tail, no wasted boundary
    DMA) unless that would shrink the block by more than ~1/3.
    """
    bytes_per_row = max(1, c * w * itemsize)
    max_th = budget // bytes_per_row
    if max_th >= h:
        return h
    if max_th < 8:
        # TODO(synk): tile W as well for very large C*W inputs; not needed for
        # segmentation-sized class counts / widths.
        raise ValueError(
            f"logits row group c*w={c}*{w} too large for a single H-tile "
            f"within {budget} bytes; W tiling not implemented")
    max_th = (max_th // 8) * 8
    for th in range(max_th, 7, -8):
        if h % th == 0 and 3 * th >= 2 * max_th:
            return th
    return max_th


def _ce2d_kernel(x_ref, t_ref, out_ref, *, c, h_total, tile_h, ragged):
    """Per-(image, H-tile) partial cross-entropy.

    x_ref:   (1, C, TH, W) logits block (original NCHW layout, no transpose)
    t_ref:   (1, TH, W)    int32 targets (255 == ignore)
    out_ref: (1, 1, 8, 128) packed partials: [0,0,0,0]=loss sum, [0,0,0,1]=count
    """
    t = t_ref[0]  # (TH, W) int32

    # Pass 1: per-pixel max over classes. Unrolled per-plane loop -> only a
    # (TH, W) accumulator lives; no (C, TH, W) temporary ever materializes.
    m = x_ref[0, 0].astype(jnp.float32)
    for ci in range(1, c):
        m = jnp.maximum(m, x_ref[0, ci].astype(jnp.float32))

    # Pass 2 (fused): accumulate exp(x_c - m) AND the target-class logit.
    # The gather is a scalar-per-class compare (t == ci) reusing the same
    # subtraction as the exp pass -> tgt = x_target - m for valid targets.
    s = jnp.zeros_like(m)
    tgt = jnp.zeros_like(m)
    for ci in range(c):
        xs = x_ref[0, ci].astype(jnp.float32) - m
        s = s + jnp.exp(xs)
        tgt = tgt + jnp.where(t == ci, xs, 0.0)

    valid = t != IGNORE_INDEX
    if ragged:
        # Only compiled when h % tile_h != 0: mask rows past the true H.
        row = jax.lax.broadcasted_iota(jnp.int32, t.shape, 0) + pl.program_id(1) * tile_h
        valid = valid & (row < h_total)

    # loss = lse - x_t = (lse - m) - (x_t - m) = log(s) - tgt   (valid pixels)
    # TODO(synk): targets >= C (other than 255) yield loss = lse - m here,
    # whereas PyTorch would raise; out-of-range labels are assumed absent.
    loss = jnp.where(valid, jnp.log(s) - tgt, 0.0)
    psum = jnp.sum(loss)
    pcnt = jnp.sum(valid.astype(jnp.float32))

    # Pack both partials into one lane-dense (8,128) tile:
    # lane 0 = loss sum, lane 1 = valid count, everything else 0.
    sub = jax.lax.broadcasted_iota(jnp.int32, (8, 128), 0)
    lane = jax.lax.broadcasted_iota(jnp.int32, (8, 128), 1)
    vals = jnp.where(lane == 0, psum, jnp.where(lane == 1, pcnt, 0.0))
    out_ref[0, 0] = jnp.where(sub == 0, vals, 0.0)


@jax.jit
def cross_entropy2d(logits_nchw, target_nhw):
    """Pallas equivalent of _cross_entropy2d.forward (weight=None, mean reduction)."""
    n, c, h, w = logits_nchw.shape
    budget, vmem_limit = _vmem_budget()
    itemsize = jnp.dtype(logits_nchw.dtype).itemsize
    tile_h = _choose_tile_h(c, h, w, itemsize, budget)
    gh = pl.cdiv(h, tile_h)
    ragged = (h % tile_h) != 0
    t = target_nhw.astype(jnp.int32)

    kernel = functools.partial(
        _ce2d_kernel, c=c, h_total=h, tile_h=tile_h, ragged=ragged)

    parts = pl.pallas_call(
        kernel,
        out_shape=jax.ShapeDtypeStruct((n, gh, 8, 128), jnp.float32),
        grid_spec=pltpu.PrefetchScalarGridSpec(
            num_scalar_prefetch=0,
            grid=(n, gh),
            in_specs=[
                pl.BlockSpec((1, c, tile_h, w), lambda i, j: (i, 0, j, 0)),
                pl.BlockSpec((1, tile_h, w), lambda i, j: (i, j, 0)),
            ],
            out_specs=pl.BlockSpec((1, 1, 8, 128), lambda i, j: (i, j, 0, 0)),
        ),
        compiler_params=pltpu.CompilerParams(
            dimension_semantics=("parallel", "parallel"),
            vmem_limit_bytes=vmem_limit,
        ),
    )(logits_nchw, t)

    # Tiny XLA finish: 'elementwise_mean' == sum over valid / #valid.
    # (All-ignore input gives 0/0 -> NaN, matching PyTorch mean reduction.)
    psum = jnp.sum(parts[:, :, 0, 0])
    pcnt = jnp.sum(parts[:, :, 0, 1])
    return psum / pcnt


def _reference(logits_nchw, target_nhw):
    n, c, h, w = logits_nchw.shape
    x = jnp.transpose(logits_nchw, (0, 2, 3, 1)).reshape(-1, c).astype(jnp.float32)
    t = target_nhw.reshape(-1).astype(jnp.int32)
    logp = jax.nn.log_softmax(x, axis=-1)
    valid = t != IGNORE_INDEX
    safe_t = jnp.where(valid, t, 0)
    nll = -jnp.take_along_axis(logp, safe_t[:, None], axis=-1)[:, 0]
    return jnp.sum(jnp.where(valid, nll, 0.0)) / jnp.sum(valid)


if __name__ == "__main__":
    key = jax.random.PRNGKey(0)
    k1, k2, k3 = jax.random.split(key, 3)

    N, C, H, W = 2, 4, 16, 16
    logits = jax.random.normal(k1, (N, C, H, W), dtype=jnp.float32)
    target = jax.random.randint(k2, (N, H, W), 0, C, dtype=jnp.int32)
    # sprinkle some ignore_index=255 pixels
    ignore_mask = jax.random.bernoulli(k3, 0.1, (N, H, W))
    target = jnp.where(ignore_mask, IGNORE_INDEX, target)

    # f32 logits
    loss = cross_entropy2d(logits, target)
    jax.block_until_ready(loss)
    ref = _reference(logits, target)
    np.testing.assert_allclose(np.asarray(loss), np.asarray(ref),
                               rtol=1e-5, atol=1e-6)

    # bf16 logits (halves HBM traffic; kernel upcasts per plane, math in f32)
    logits_bf16 = logits.astype(jnp.bfloat16)
    loss_bf16 = cross_entropy2d(logits_bf16, target)
    jax.block_until_ready(loss_bf16)
    ref_bf16 = _reference(logits_bf16.astype(jnp.float32), target)
    np.testing.assert_allclose(np.asarray(loss_bf16), np.asarray(ref_bf16),
                               rtol=1e-4, atol=1e-5)

    print("KERNEL_OK")
</pallas_src>

<mosaic_0001>
module attributes {stable_mosaic.version = 11 : i64} {
  func.func @_ce2d_kernel(%arg0: i32, %arg1: i32, %arg2: memref<1x4x16x16xf32, #tpu.memory_space<vmem>>, %arg3: memref<1x16x16xi32, #tpu.memory_space<vmem>>, %arg4: memref<1x1x8x128xf32, #tpu.memory_space<vmem>>) attributes {dimension_semantics = [#tpu.dimension_semantics<parallel>, #tpu.dimension_semantics<parallel>], iteration_bounds = array<i64: 2, 1>, scalar_prefetch = 0 : i64, scratch_operands = 0 : i64, tpu.core_type = #tpu.core_type<tc>, window_params = [{transform_indices = @transform_0, window_bounds = array<i64: 1, 4, 16, 16>}, {transform_indices = @transform_1, window_bounds = array<i64: 1, 16, 16>}, {transform_indices = @transform_2, window_bounds = array<i64: 1, 1, 8, 128>}]} {
    %c0 = arith.constant 0 : index
    %c0_0 = arith.constant 0 : index
    %c0_1 = arith.constant 0 : index
    %0 = vector.load %arg3[%c0, %c0_0, %c0_1] : memref<1x16x16xi32, #tpu.memory_space<vmem>>, vector<1x16x16xi32>
    %1 = vector.shape_cast %0 : vector<1x16x16xi32> to vector<16x16xi32>
    %c0_2 = arith.constant 0 : index
    %c0_3 = arith.constant 0 : index
    %c0_4 = arith.constant 0 : index
    %c0_5 = arith.constant 0 : index
    %2 = vector.load %arg2[%c0_2, %c0_3, %c0_4, %c0_5] : memref<1x4x16x16xf32, #tpu.memory_space<vmem>>, vector<1x1x16x16xf32>
    %3 = vector.shape_cast %2 : vector<1x1x16x16xf32> to vector<16x16xf32>
    %c0_6 = arith.constant 0 : index
    %c1 = arith.constant 1 : index
    %c0_7 = arith.constant 0 : index
    %c0_8 = arith.constant 0 : index
    %4 = vector.load %arg2[%c0_6, %c1, %c0_7, %c0_8] : memref<1x4x16x16xf32, #tpu.memory_space<vmem>>, vector<1x1x16x16xf32>
    %5 = vector.shape_cast %4 : vector<1x1x16x16xf32> to vector<16x16xf32>
    %6 = arith.maximumf %3, %5 : vector<16x16xf32>
    %c0_9 = arith.constant 0 : index
    %c2 = arith.constant 2 : index
    %c0_10 = arith.constant 0 : index
    %c0_11 = arith.constant 0 : index
    %7 = vector.load %arg2[%c0_9, %c2, %c0_10, %c0_11] : memref<1x4x16x16xf32, #tpu.memory_space<vmem>>, vector<1x1x16x16xf32>
    %8 = vector.shape_cast %7 : vector<1x1x16x16xf32> to vector<16x16xf32>
    %9 = arith.maximumf %6, %8 : vector<16x16xf32>
    %c0_12 = arith.constant 0 : index
    %c3 = arith.constant 3 : index
    %c0_13 = arith.constant 0 : index
    %c0_14 = arith.constant 0 : index
    %10 = vector.load %arg2[%c0_12, %c3, %c0_13, %c0_14] : memref<1x4x16x16xf32, #tpu.memory_space<vmem>>, vector<1x1x16x16xf32>
    %11 = vector.shape_cast %10 : vector<1x1x16x16xf32> to vector<16x16xf32>
    %12 = arith.maximumf %9, %11 : vector<16x16xf32>
    %cst = arith.constant 0.000000e+00 : f32
    %13 = vector.broadcast %cst : f32 to vector<16x16xf32>
    %cst_15 = arith.constant 0.000000e+00 : f32
    %14 = vector.broadcast %cst_15 : f32 to vector<16x16xf32>
    %c0_16 = arith.constant 0 : index
    %c0_17 = arith.constant 0 : index
    %c0_18 = arith.constant 0 : index
    %c0_19 = arith.constant 0 : index
    %15 = vector.load %arg2[%c0_16, %c0_17, %c0_18, %c0_19] : memref<1x4x16x16xf32, #tpu.memory_space<vmem>>, vector<1x1x16x16xf32>
    %16 = vector.shape_cast %15 : vector<1x1x16x16xf32> to vector<16x16xf32>
    %17 = arith.subf %16, %12 : vector<16x16xf32>
    %18 = math.exp %17 : vector<16x16xf32>
    %19 = arith.addf %13, %18 : vector<16x16xf32>
    %c0_i32 = arith.constant 0 : i32
    %20 = vector.broadcast %c0_i32 : i32 to vector<16x16xi32>
    %21 = arith.cmpi eq, %1, %20 : vector<16x16xi32>
    %cst_20 = arith.constant 0.000000e+00 : f32
    %22 = vector.broadcast %cst_20 : f32 to vector<16x16xf32>
    %23 = arith.select %21, %17, %22 : vector<16x16xi1>, vector<16x16xf32>
    %24 = arith.addf %14, %23 : vector<16x16xf32>
    %c0_21 = arith.constant 0 : index
    %c1_22 = arith.constant 1 : index
    %c0_23 = arith.constant 0 : index
    %c0_24 = arith.constant 0 : index
    %25 = vector.load %arg2[%c0_21, %c1_22, %c0_23, %c0_24] : memref<1x4x16x16xf32, #tpu.memory_space<vmem>>, vector<1x1x16x16xf32>
    %26 = vector.shape_cast %25 : vector<1x1x16x16xf32> to vector<16x16xf32>
    %27 = arith.subf %26, %12 : vector<16x16xf32>
    %28 = math.exp %27 : vector<16x16xf32>
    %29 = arith.addf %19, %28 : vector<16x16xf32>
    %c1_i32 = arith.constant 1 : i32
    %30 = vector.broadcast %c1_i32 : i32 to vector<16x16xi32>
    %31 = arith.cmpi eq, %1, %30 : vector<16x16xi32>
    %cst_25 = arith.constant 0.000000e+00 : f32
    %32 = vector.broadcast %cst_25 : f32 to vector<16x16xf32>
    %33 = arith.select %31, %27, %32 : vector<16x16xi1>, vector<16x16xf32>
    %34 = arith.addf %24, %33 : vector<16x16xf32>
    %c0_26 = arith.constant 0 : index
    %c2_27 = arith.constant 2 : index
    %c0_28 = arith.constant 0 : index
    %c0_29 = arith.constant 0 : index
    %35 = vector.load %arg2[%c0_26, %c2_27, %c0_28, %c0_29] : memref<1x4x16x16xf32, #tpu.memory_space<vmem>>, vector<1x1x16x16xf32>
    %36 = vector.shape_cast %35 : vector<1x1x16x16xf32> to vector<16x16xf32>
    %37 = arith.subf %36, %12 : vector<16x16xf32>
    %38 = math.exp %37 : vector<16x16xf32>
    %39 = arith.addf %29, %38 : vector<16x16xf32>
    %c2_i32 = arith.constant 2 : i32
    %40 = vector.broadcast %c2_i32 : i32 to vector<16x16xi32>
    %41 = arith.cmpi eq, %1, %40 : vector<16x16xi32>
    %cst_30 = arith.constant 0.000000e+00 : f32
    %42 = vector.broadcast %cst_30 : f32 to vector<16x16xf32>
    %43 = arith.select %41, %37, %42 : vector<16x16xi1>, vector<16x16xf32>
    %44 = arith.addf %34, %43 : vector<16x16xf32>
    %c0_31 = arith.constant 0 : index
    %c3_32 = arith.constant 3 : index
    %c0_33 = arith.constant 0 : index
    %c0_34 = arith.constant 0 : index
    %45 = vector.load %arg2[%c0_31, %c3_32, %c0_33, %c0_34] : memref<1x4x16x16xf32, #tpu.memory_space<vmem>>, vector<1x1x16x16xf32>
    %46 = vector.shape_cast %45 : vector<1x1x16x16xf32> to vector<16x16xf32>
    %47 = arith.subf %46, %12 : vector<16x16xf32>
    %48 = math.exp %47 : vector<16x16xf32>
    %49 = arith.addf %39, %48 : vector<16x16xf32>
    %c3_i32 = arith.constant 3 : i32
    %50 = vector.broadcast %c3_i32 : i32 to vector<16x16xi32>
    %51 = arith.cmpi eq, %1, %50 : vector<16x16xi32>
    %cst_35 = arith.constant 0.000000e+00 : f32
    %52 = vector.broadcast %cst_35 : f32 to vector<16x16xf32>
    %53 = arith.select %51, %47, %52 : vector<16x16xi1>, vector<16x16xf32>
    %54 = arith.addf %44, %53 : vector<16x16xf32>
    %c255_i32 = arith.constant 255 : i32
    %55 = vector.broadcast %c255_i32 : i32 to vector<16x16xi32>
    %56 = arith.cmpi ne, %1, %55 : vector<16x16xi32>
    %57 = math.log %49 : vector<16x16xf32>
    %58 = arith.subf %57, %54 : vector<16x16xf32>
    %cst_36 = arith.constant 0.000000e+00 : f32
    %59 = vector.broadcast %cst_36 : f32 to vector<16x16xf32>
    %60 = arith.select %56, %58, %59 : vector<16x16xi1>, vector<16x16xf32>
    %61 = vector.shape_cast %60 : vector<16x16xf32> to vector<1x16x16xf32>
    %cst_37 = arith.constant dense<0.000000e+00> : vector<1xf32>
    %62 = vector.multi_reduction <add>, %61, %cst_37 [1, 2] : vector<1x16x16xf32> to vector<1xf32>
    %63 = vector.shape_cast %62 : vector<1xf32> to vector<1x1x1xf32>
    %64 = vector.extract %63[0, 0, 0] : f32 from vector<1x1x1xf32>
    %65 = arith.extui %56 : vector<16x16xi1> to vector<16x16xi32>
    %66 = arith.sitofp %65 : vector<16x16xi32> to vector<16x16xf32>
    %67 = vector.shape_cast %66 : vector<16x16xf32> to vector<1x16x16xf32>
    %cst_38 = arith.constant dense<0.000000e+00> : vector<1xf32>
    %68 = vector.multi_reduction <add>, %67, %cst_38 [1, 2] : vector<1x16x16xf32> to vector<1xf32>
    %69 = vector.shape_cast %68 : vector<1xf32> to vector<1x1x1xf32>
    %70 = vector.extract %69[0, 0, 0] : f32 from vector<1x1x1xf32>
    %71 = tpu.iota {dimensions = array<i32: 0>} : vector<8x128xi32>
    %72 = tpu.iota {dimensions = array<i32: 1>} : vector<8x128xi32>
    %c0_i32_39 = arith.constant 0 : i32
    %73 = vector.broadcast %c0_i32_39 : i32 to vector<8x128xi32>
    %74 = arith.cmpi eq, %72, %73 : vector<8x128xi32>
    %c1_i32_40 = arith.constant 1 : i32
    %75 = vector.broadcast %c1_i32_40 : i32 to vector<8x128xi32>
    %76 = arith.cmpi eq, %72, %75 : vector<8x128xi32>
    %cst_41 = arith.constant 0.000000e+00 : f32
    %77 = vector.broadcast %70 : f32 to vector<8x128xf32>
    %78 = vector.broadcast %cst_41 : f32 to vector<8x128xf32>
    %79 = arith.select %76, %77, %78 : vector<8x128xi1>, vector<8x128xf32>
    %80 = vector.broadcast %64 : f32 to vector<8x128xf32>
    %81 = arith.select %74, %80, %79 : vector<8x128xi1>, vector<8x128xf32>
    %c0_i32_42 = arith.constant 0 : i32
    %82 = vector.broadcast %c0_i32_42 : i32 to vector<8x128xi32>
    %83 = arith.cmpi eq, %71, %82 : vector<8x128xi32>
    %cst_43 = arith.constant 0.000000e+00 : f32
    %84 = vector.broadcast %cst_43 : f32 to vector<8x128xf32>
    %85 = arith.select %83, %81, %84 : vector<8x128xi1>, vector<8x128xf32>
    %c0_44 = arith.constant 0 : index
    %c0_45 = arith.constant 0 : index
    %c0_46 = arith.constant 0 : index
    %c0_47 = arith.constant 0 : index
    %86 = vector.load %arg4[%c0_44, %c0_45, %c0_46, %c0_47] : memref<1x1x8x128xf32, #tpu.memory_space<vmem>>, vector<1x1x8x128xf32>
    %87 = vector.shape_cast %86 : vector<1x1x8x128xf32> to vector<8x128xf32>
    %88 = vector.shape_cast %85 : vector<8x128xf32> to vector<1x1x8x128xf32>
    tpu.vector_store %arg4[%c0_44, %c0_45, %c0_46, %c0_47], %88 {strides = array<i32>} : memref<1x1x8x128xf32, #tpu.memory_space<vmem>>, vector<1x1x8x128xf32>,
    return
  }
  func.func @transform_0(%arg0: i32, %arg1: i32) -> (i32, i32, i32, i32) {
    %c0_i32 = arith.constant 0 : i32
    %c0_i32_0 = arith.constant 0 : i32
    %c0_i32_1 = arith.constant 0 : i32
    return %arg0, %c0_i32, %arg1, %c0_i32_0 : i32, i32, i32, i32
  }
  func.func @transform_1(%arg0: i32, %arg1: i32) -> (i32, i32, i32) {
    %c0_i32 = arith.constant 0 : i32
    %c0_i32_0 = arith.constant 0 : i32
    return %arg0, %arg1, %c0_i32 : i32, i32, i32
  }
  func.func @transform_2(%arg0: i32, %arg1: i32) -> (i32, i32, i32, i32) {
    %c0_i32 = arith.constant 0 : i32
    %c0_i32_0 = arith.constant 0 : i32
    %c0_i32_1 = arith.constant 0 : i32
    return %arg0, %arg1, %c0_i32, %c0_i32_0 : i32, i32, i32, i32
  }
}

</mosaic_0001>

<bundles_post_ra>
// kernel: cross_entropy2d.1
= control target key start
LH: loop header
LB: loop body
LE: loop exit
PB: predicated region body
PF: predicated region fallthrough
CT: control target
= control target key end

     0   :  { %7 = vsyncpa [#allocation3], 0  ;;  %s836_s0 = inlined_call_operand.hbm [shape: f32[2,4,16,16], index: 0, kind: input, shape index: {}]   ;;  %s837_s1 = inlined_call_operand.hbm [shape: s32[2,16,16], index: 1, kind: input, shape index: {}]   ;;  %s838_s2 = inlined_call_operand.vmem [shape: f32[2,1,8,128], index: 2, kind: output, shape index: {}]  }
   0x1   :  { %9 = vsyncpa [#allocation3 + $0x1], 0 }
   0x2   :  { %10 = vsyncpa [#allocation5], 0 }
   0x3   :  { %12 = vsyncpa [#allocation5 + $0x1], 0  ;;  %s722_s9 = smov 0   ;;  %s724_s10 = smov 0  }
   0x4   :  { %s726_s11 = smov 0   ;;  %s728_s12 = smov 0  }
   0x5   :  { %s730_s13 = smov 0   ;;  %s732_s14 = smov 0  }
   0x6 LB: > { %s475_s15 = sadd.s32 4294967295, %s702_s14   ;;  %s30_s16 = sadd.s32 1, %s698_s13  ;;  %s702_s14 = sphi %s732_s14, %s18_s14   ;;  %s698_s13 = sphi %s730_s13, %s846_s13   ;;  %s694_s12 = sphi %s728_s12, %s845_s12   ;;  %s690_s11 = sphi %s726_s11, %s844_s11   ;;  %s686_s10 = sphi %s724_s10, %s843_s10   ;;  %s682_s9 = sphi %s722_s9, %s842_s9  }
   0x7   : > { %p32_p0 = scmp.ge.s32.totalorder %s30_s16, 2  ;;  %s39_s17 = sadd.s32 1, %s690_s11 }
   0x8   : > { %p46_p1 = scmp.ne.s32.totalorder %s690_s11, %s686_s10  ;;  %p47_p2 = scmp.eq.s32.totalorder %s702_s14, 0 }
   0x9   : > { %s848_s16 = smov (%p32_p0, %s30_s16), 0  ;;  %p52_p4 = scmp.ne.s32.totalorder %s686_s10, %s682_s9 }
   0xa   : > { %p758_p3 = por %p47_p2, %p46_p1  ;;  %s34_s19 = ssub.s32 %s698_s13, %s848_s16 }
   0xb   : > { %p53_p5 = scmp.eq.s32.totalorder %s475_s15, 0  ;;  %p37_p6 = scmp.eq.s32.totalorder %s34_s19, 0 }
   0xc   : > { %p516_p8 = scmp.lt.s32.totalorder %s702_s14, 2  ;;  %s774_s22 = sand.u32 1, %s690_s11  }
   0xd   : > { %p765_p7 = por %p53_p5, %p52_p4  ;;  %s499_s23 = sshll.u32 %s698_s13, 6 }
   0xe   : > { %s771_s21 = scalar_select %p37_p6, %s690_s11, %s39_s17  }
   0xf   : > { %s479_s24 = sshll.u32 %s774_s22, 6  ;;  %s143_s27 = scalar_lea.hbm %s836_s0, %s499_s23 }
  0x10   : > { %s144_s28 = sshll.u32 %s143_s27, 4  ;;  %s136_s29 = scalar_lea.vmem [#allocation2], %s479_s24  ;;  %s145_s28 = int_to_ptr.hbm [resolvable:$true] %s144_s28 }
  0x11   : > { %s146_s30 = sshll.u32 %s136_s29, 4  ;;  %p783_p9 = pnand %p516_p8, %p758_p3  ;;  %s147_s30 = int_to_ptr.vmem [resolvable:$true] %s146_s30 }
  0x12   : > { %p485_p10 = scmp.ge.s32.totalorder %s702_s14, 1  ;;  %p178_p11 = scmp.lt.s32.totalorder %s702_s14, 3 }
  0x13   : > { %s133_s4 = scalar_lea.sflag [#allocation3], %s774_s22  ;;  %s704_s5 = smov 128  }
  0x14   : > { %s705_s6 = smov 8   ;;  %p179_p12 = pnand %p485_p10, %p178_p11 }
  0x15   : > { %512 = dma.hbm_to_vmem [thread:$0]  (!%p783_p9), %s145_s28, 1024, %s147_s30, %s133_s4, %s704_s5, %s704_s5, %s705_s6  }
  0x16   : > { %s482_s7 = sshll.u32 %s774_s22, 4  ;;  %s500_s8 = sshll.u32 %s698_s13, 4 }
  0x17   : > { %s167_s17 = scalar_lea.hbm %s837_s1, %s500_s8  ;;  %s160_s19 = scalar_lea.vmem [#allocation4], %s482_s7 }
  0x18   : > { %s168_s18 = sshll.u32 %s167_s17, 4  ;;  %s170_s23 = sshll.u32 %s160_s19, 4  ;;  %s169_s18 = int_to_ptr.hbm [resolvable:$true] %s168_s18  ;;  %s171_s23 = int_to_ptr.vmem [resolvable:$true] %s170_s23 }
  0x19   : > { %s157_s24 = scalar_lea.sflag [#allocation5], %s774_s22  ;;  %182 = sbr.rel (%p179_p12) target bundleno = 268 (0x10c), region = 28 }
  0x1a   : > { %515 = dma.hbm_to_vmem [thread:$0]  (!%p783_p9), %s169_s18, 256, %s171_s23, %s157_s24, %s704_s5, %s704_s5, %s705_s6  }
  0x1b   : > { %s184_s25 = sand.u32 (!%p179_p12), 1, %s686_s10  }
  0x1c   : > { %s486_s26 = sshll.u32 (!%p179_p12), %s184_s25, 6  ;;  %s185_s27 = scalar_lea.sflag (!%p179_p12), [#allocation3], %s184_s25 }
  0x1d   : > { %s188_s28 = scalar_lea.vmem (!%p179_p12), [#allocation2], %s486_s26 }
  0x1e   : > { %673 = dma.done.wait (%p765_p7), %s185_s27, 1024  }
  0x1f   : > { %675 = vsyncadd (%p765_p7), %s185_s27, 4294966272  ;;  %s487_s29 = sshll.u32 %s184_s25, 4  ;;  %s195_s30 = scalar_lea.sflag [#allocation5], %s184_s25 }
  0x20   : > { %s805_s4 = scalar_lea.vmem [#allocation4], %s487_s29 }
  0x21   : > { %677 = dma.done.wait (%p765_p7), %s195_s30, 256  }
  0x22   : > { %679 = vsyncadd (%p765_p7), %s195_s30, 4294967040  ;;  %v238_v0 = vld [vmem:[%s188_s28] sm:$0xff]  ;;  %v239_v1 = vld [vmem:[%s188_s28 + $0x8] sm:$0xff]  ;;  %vm321_vm10 = vcmask 130048   ;;  %p229_p13 = scmp.lt.s32.totalorder %s694_s12, 1 }
  0x23   : > { %v489_v2 = vld [vmem:[%s188_s28 + $0x10] sm:$0xff]  ;;  %v490_v3 = vld [vmem:[%s188_s28 + $0x18] sm:$0xff]  ;;  %v491_v6 = vld [vmem:[%s188_s28 + $0x20] sm:$0xff] }
  0x24   : > { %v243_v4 = vmax.f32 %v238_v0, %v489_v2  ;;  %v244_v5 = vmax.f32 %v239_v1, %v490_v3  ;;  %v492_v7 = vld [vmem:[%s188_s28 + $0x28] sm:$0xff]  ;;  %v493_v8 = vld [vmem:[%s188_s28 + $0x30] sm:$0xff]  ;;  %v494_v9 = vld [vmem:[%s188_s28 + $0x38] sm:$0xff]  ;;  %s850_s12 = smov (!%p229_p13, %s694_s12), 1 }
  0x25   : > { %v236_v29 = vld [vmem:[%s805_s4] sm:$0xff]  ;;  %v237_v31 = vld [vmem:[%s805_s4 + $0x8] sm:$0xff]  ;;  %s488_s22 = sshll.u32 %s850_s12, 3 }
  0x26   : > { %v248_v10 = vmax.f32 %v243_v4, %v491_v6  ;;  %v249_v11 = vmax.f32 %v244_v5, %v492_v7  ;;  %vm263_vm0 = vcmp.eq.s32.totalorder %v236_v29, 0  ;;  %vm277_vm1 = vcmp.eq.s32.totalorder %v236_v29, 1  ;;  %s235_s7 = scalar_lea.vmem %s838_s2, %s488_s22 }
  0x27   : > { %vm264_vm2 = vcmp.eq.s32.totalorder %v237_v31, 0  ;;  %vm278_vm3 = vcmp.eq.s32.totalorder %v237_v31, 1  ;;  %vm291_vm4 = vcmp.eq.s32.totalorder %v236_v29, 2  ;;  %vm292_vm5 = vcmp.eq.s32.totalorder %v237_v31, 2 }
  0x28   : > { %v253_v12 = vmax.f32 %v248_v10, %v493_v8  ;;  %v254_v13 = vmax.f32 %v249_v11, %v494_v9  ;;  %vm305_vm6 = vcmp.eq.s32.totalorder %v236_v29, 3  ;;  %vm306_vm7 = vcmp.eq.s32.totalorder %v237_v31, 3 }
  0x29   : > { %vm311_vm8 = vcmp.ne.s32.totalorder %v236_v29, 255  ;;  %vm312_vm9 = vcmp.ne.s32.totalorder %v237_v31, 255 }
  0x2a   : > { %v255_v14 = vsub.f32 %v238_v0, %v253_v12  ;;  %v256_v15 = vsub.f32 %v239_v1, %v254_v13  ;;  %v269_v16 = vsub.f32 %v489_v2, %v253_v12  ;;  %v270_v17 = vsub.f32 %v490_v3, %v254_v13 }
  0x2b   : > { %v283_v18 = vsub.f32 %v491_v6, %v253_v12  ;;  %v284_v19 = vsub.f32 %v492_v7, %v254_v13  ;;  %v297_v22 = vsub.f32 %v493_v8, %v253_v12  ;;  %v298_v25 = vsub.f32 %v494_v9, %v254_v13 }
  0x2c   : > { %v257_v20 = vmul.f32 1.442695, %v255_v14  ;;  %v259_v21 = vmul.f32 1.442695, %v256_v15  ;;  %v271_v23 = vmul.f32 1.442695, %v269_v16 }
  0x2d   : > { %v273_v24 = vmul.f32 1.442695, %v270_v17  ;;  %v285_v26 = vmul.f32 1.442695, %v283_v18  ;;  %v287_v27 = vmul.f32 1.442695, %v284_v19 }
  0x2e   : > { %568 = vpow2.f32 %v257_v20  ;;  %v299_v28 = vmul.f32 1.442695, %v297_v22  ;;  %v301_v30 = vmul.f32 1.442695, %v298_v25  ;;  %v265_v36 = vsel %vm263_vm0, %v255_v14, 0.0 }
  0x2f   : > { %570 = vpow2.f32 %v259_v21  ;;  %v279_v38 = vsel %vm277_vm1, %v269_v16, 0.0  ;;  %v266_v40 = vsel %vm264_vm2, %v256_v15, 0.0  ;;  %v280_v42 = vsel %vm278_vm3, %v270_v17, 0.0 }
  0x30   : > { %572 = vpow2.f32 %v271_v23  ;;  %v281_v46 = vadd.f32 %v279_v38, %v265_v36  ;;  %v282_v49 = vadd.f32 %v280_v42, %v266_v40  ;;  %v293_v50 = vsel %vm291_vm4, %v283_v18, 0.0 }
  0x31   : > { %574 = vpow2.f32 %v273_v24  ;;  %v294_v52 = vsel %vm292_vm5, %v284_v19, 0.0  ;;  %v307_v56 = vsel %vm305_vm6, %v297_v22, 0.0  ;;  %v308_v57 = vsel %vm306_vm7, %v298_v25, 0.0 }
  0x32   : > { %576 = vpow2.f32 %v285_v26  ;;  %v295_v54 = vadd.f32 %v293_v50, %v281_v46  ;;  %v296_v55 = vadd.f32 %v294_v52, %v282_v49  ;;  %v706_v7 = vmov 0.0  }
  0x33   : > { %578 = vpow2.f32 %v287_v27  ;;  %v495_v8 = vsel %vm311_vm8, 1.0, %v706_v7  ;;  %v496_v9 = vsel %vm312_vm9, 1.0, %v706_v7  ;;  %v350_v27 = vlaneseq }
  0x34   : > { %v569_v32 = vpop.eup %568  ;;  %580 = vpow2.f32 %v299_v28  ;;  %v309_v58 = vadd.f32 %v307_v56, %v295_v54  ;;  %v310_v60 = vadd.f32 %v308_v57, %v296_v55  ;;  %v338_v10 = vsel %vm321_vm10, %v495_v8, 0.0 }
  0x35   : > { %v571_v33 = vpop.eup %570  ;;  %582 = vpow2.f32 %v301_v30  ;;  %v339_v11 = vsel %vm321_vm10, %v496_v9, 0.0  ;;  %v353_v28 = vand.u32 127, %v350_v27  ;;  %v351_v29 = vshrl.u32 %v350_v27, 7 }
  0x36   : > { %v573_v34 = vpop.eup %572  ;;  %v340_v12 = vadd.f32 %v339_v11, %v338_v10 }
  0x37   : > { %v575_v35 = vpop.eup %574  ;;  %v275_v37 = vadd.f32 %v573_v34, %v569_v32  ;;  %vm355_vm11 = vcmp.eq.s32.totalorder %v353_v28, 1  ;;  %vm354_vm12 = vcmp.eq.s32.totalorder %v353_v28, 0  ;;  %vm360_vm13 = vcmp.eq.s32.totalorder %v351_v29, 0 }
  0x38   : > { %v577_v39 = vpop.eup %576  ;;  %v276_v41 = vadd.f32 %v575_v35, %v571_v33 }
  0x39   : > { %v579_v43 = vpop.eup %578  ;;  %v289_v44 = vadd.f32 %v577_v39, %v275_v37 }
  0x3a   : > { %v581_v45 = vpop.eup %580  ;;  %v290_v47 = vadd.f32 %v579_v43, %v276_v41 }
  0x3b   : > { %v583_v48 = vpop.eup %582  ;;  %v303_v51 = vadd.f32 %v581_v45, %v289_v44 }
  0x3c   : > { %v304_v53 = vadd.f32 %v583_v48, %v290_v47 }
  0x3d   : > { %584 = vlog2.f32 %v303_v51 }
  0x3e   : > { %586 = vlog2.f32 %v304_v53 }
  0x43   : > { %v585_v59 = vpop.eup %584 }
  0x44   : > { %v587_v61 = vpop.eup %586  ;;  %v314_v62 = vmul.f32 0.6931472, %v585_v59 }
  0x45   : > { %v316_v63 = vmul.f32 0.6931472, %v587_v61 }
  0x46   : > { %v317_v0 = vsub.f32 %v314_v62, %v309_v58 }
  0x47   : > { %v318_v1 = vsub.f32 %v316_v63, %v310_v60 }
  0x48   : > { %v319_v2 = vsel %vm311_vm8, %v317_v0, 0.0 }
  0x49   : > { %v320_v3 = vsel %vm312_vm9, %v318_v1, 0.0  ;;  %v322_v4 = vsel %vm321_vm10, %v319_v2, 0.0 }
  0x4a   : > { %v323_v5 = vsel %vm321_vm10, %v320_v3, 0.0 }
  0x4b   : > { %v324_v6 = vadd.f32 %v323_v5, %v322_v4 }
  0x4d   : > { %325 = vadd.xlane.f32.xlu0 %v324_v6 }
  0x55   : > { %341 = vadd.xlane.f32.xlu0 %v340_v12 }
  0xc0   : > { %v326_v13 = vpop.xlane.xlu0 %325 }
  0xc1   : > { %v327_v14 = vrot.slane %v326_v13, 4 }
  0xc3   : > { %v328_v15 = vadd.f32 %v327_v14, %v326_v13 }
  0xc5   : > { %v329_v16 = vrot.slane %v328_v15, 2 }
  0xc7   : > { %v330_v17 = vadd.f32 %v329_v16, %v328_v15 }
  0xc8   : > { %v342_v18 = vpop.xlane.xlu0 %341 }
  0xc9   : > { %v343_v19 = vrot.slane %v342_v18, 4  ;;  %v331_v20 = vrot.slane %v330_v17, 1 }
  0xcb   : > { %v344_v21 = vadd.f32 %v343_v19, %v342_v18  ;;  %v332_v22 = vadd.f32 %v331_v20, %v330_v17 }
  0xcd   : > { %v345_v23 = vrot.slane %v344_v21, 2  ;;  %501 = vpush %v332_v22 }
  0xcf   : > { %v346_v24 = vadd.f32 %v345_v23, %v344_v21 }
  0xd1   : > { %v347_v25 = vrot.slane %v346_v24, 1 }
  0xd3   : > { %v348_v26 = vadd.f32 %v347_v25, %v346_v24 }
  0xd5   : > { %503 = vpush %v348_v26 }
  0xfe   : > { %s502_s20 = spop %501 }
  0xff   : > { %v358_v31 = vstv %s502_s20 }
 0x106   : > { %s504_s3 = spop %503 }
 0x107   : > { %v356_v30 = vstv %s504_s3 }
 0x108   : > { %v357_v32 = vsel %vm355_vm11, %v356_v30, 0.0 }
 0x109   : > { %v359_v33 = vsel %vm354_vm12, %v358_v31, %v357_v32 }
 0x10a   : > { %v361_v34 = vsel %vm360_vm13, %v359_v33, 0.0 }
 0x10b   : > { %362 = vst [vmem:[%s235_s7] sm:$0xff] %v361_v34 }
 0x10c PF: > { %s18_s14 = sadd.s32 1, %s702_s14   ;;  %s842_s9 = smov %s686_s10 }
 0x10d   : > { %p15_p0 = scmp.ge.s32.totalorder %s18_s14, 4   ;;  %s843_s10 = smov %s690_s11 }
 0x10e   : > { %s844_s11 = smov %s771_s21  ;;  %s845_s12 = smov %s698_s13 }
 0x10f   : > { %s846_s13 = smov %s848_s16  ;;  %17 = sbr.rel (!%p15_p0) target bundleno = 6 (0x6), region = 84 }
 0x114   :  { %388 = vsyncpa [#allocation3], 1 }
 0x115   :  { %390 = vsyncpa [#allocation3 + $0x1], 1 }
 0x116   :  { %391 = vsyncpa [#allocation5], 1 }
 0x117   :  { %393 = vsyncpa [#allocation5 + $0x1], 1 }

</bundles_post_ra>
